<compile_context>
chip_gen: v7x
topology: tpu7x:2x2x1
jax: 0.10.0
libtpu: 0.0.40
codegen_flags: <defaults>
</compile_context>

<pallas_src>
import jax
import jax.numpy as jnp
from jax.experimental import pallas as pl
from jax.experimental.pallas import tpu as pltpu

K_IN = 784     # 28*28 flattened features
H1 = 512
H2 = 256


def _round_up(x, m):
    return ((x + m - 1) // m) * m


def _discriminator_kernel(x_ref, w1_ref, b1_ref, w2_ref, b2_ref,
                          w3_ref, b3_ref, o_ref):
    # x_ref: (TM, 784) f32 batch tile (cast to bf16 here; the VALU cast hides
    # under MXU/DMA and avoids a separate wrapper-side HBM convert pass).
    x = x_ref[...].astype(jnp.bfloat16)

    # Linear(784->512) on the MXU (bf16 inputs, f32 accumulate) + LeakyReLU(0.2).
    h1 = jnp.dot(x, w1_ref[...], preferred_element_type=jnp.float32) + b1_ref[...]
    h1 = jnp.maximum(h1, 0.2 * h1)
    # Dropout(0.3): identity (inference / eval mode).

    # Linear(512->256) + LeakyReLU(0.2).
    h2 = jnp.dot(h1.astype(jnp.bfloat16), w2_ref[...],
                 preferred_element_type=jnp.float32) + b2_ref[...]
    h2 = jnp.maximum(h2, 0.2 * h2)
    # Dropout(0.3): identity (inference / eval mode).

    # Linear(256->1): VPU multiply + XLU lane reduction instead of an N=1 MXU
    # matmul.  w3_ref is (1, 256) f32 (broadcast over rows), b3_ref is a (1,)
    # SMEM scalar.
    out = jnp.sum(h2 * w3_ref[...], axis=-1, keepdims=True) + b3_ref[0]
    o_ref[...] = out.astype(o_ref.dtype)


def prepare_params(params):
    """One-time conversion of torch-style params into kernel-ready operands."""
    w1, b1, w2, b2, w3, b3 = params
    return (
        w1.astype(jnp.bfloat16),                     # (784, 512) bf16, unpadded
        b1.reshape(1, H1).astype(jnp.float32),       # (1, 512)
        w2.astype(jnp.bfloat16),                     # (512, 256) bf16
        b2.reshape(1, H2).astype(jnp.float32),       # (1, 256)
        w3.reshape(1, H2).astype(jnp.float32),       # (1, 256) VPU row, final layer
        b3.reshape(-1).astype(jnp.float32),          # (1,) SMEM scalar
    )


@jax.jit
def discriminator_forward(img, prepared):
    """img: (B, 1, 28, 28) float32 (NCHW).  Returns (B, 1) f32 logits."""
    w1_bf, b1, w2_bf, b2, w3_row, b3_s = prepared
    B = img.shape[0]
    x = img.reshape(B, -1).astype(jnp.float32)                # (B, 784), no pad/cast pass
    assert x.shape[1] == K_IN, f"expected {K_IN} flattened features, got {x.shape[1]}"

    # Batch tile: cap at 512 (amortizes ~0.35us per-grid-step overhead), and
    # split batches >16 into >=2 grid steps so the "parallel" axis can shard
    # across both v7x TensorCores.
    if B <= 16:
        TM = _round_up(B, 8)
    else:
        TM = min(512, _round_up(pl.cdiv(B, 2), 16))
    B_pad = _round_up(B, TM)
    if B_pad != B:
        x = jnp.pad(x, ((0, B_pad - B), (0, 0)))
    grid = (B_pad // TM,)

    out = pl.pallas_call(
        _discriminator_kernel,
        out_shape=jax.ShapeDtypeStruct((B_pad, 1), jnp.float32),
        grid=grid,
        in_specs=[
            pl.BlockSpec((TM, K_IN), lambda i: (i, 0)),        # x tile (f32)
            pl.BlockSpec((K_IN, H1), lambda i: (0, 0)),        # w1 (VMEM-resident)
            pl.BlockSpec((1, H1), lambda i: (0, 0)),           # b1
            pl.BlockSpec((H1, H2), lambda i: (0, 0)),          # w2 (VMEM-resident)
            pl.BlockSpec((1, H2), lambda i: (0, 0)),           # b2
            pl.BlockSpec((1, H2), lambda i: (0, 0)),           # w3 row
            pl.BlockSpec(memory_space=pltpu.MemorySpace.SMEM), # b3 scalar
        ],
        out_specs=pl.BlockSpec((TM, 1), lambda i: (i, 0)),
        compiler_params=pltpu.CompilerParams(
            dimension_semantics=("parallel",),
            vmem_limit_bytes=32 << 20,   # ~8 MiB actual footprint at TM=512
        ),
    )(x, w1_bf, b1, w2_bf, b2, w3_row, b3_s)

    return out[:B]


def init_params(key):
    """Deterministic init mirroring torch.nn.Linear's U(-1/sqrt(fan_in), ...)."""
    def linear(key, fan_in, fan_out):
        kw, kb = jax.random.split(key)
        bound = 1.0 / jnp.sqrt(fan_in)
        # stored as (in, out) so the forward computes x @ W + b
        w = jax.random.uniform(kw, (fan_in, fan_out), jnp.float32, -bound, bound)
        b = jax.random.uniform(kb, (1, fan_out), jnp.float32, -bound, bound)
        return w, b

    k1, k2, k3 = jax.random.split(key, 3)
    w1, b1 = linear(k1, K_IN, H1)
    w2, b2 = linear(k2, H1, H2)
    w3, b3 = linear(k3, H2, 1)
    return (w1, b1, w2, b2, w3, b3)


if __name__ == "__main__":
    key = jax.random.PRNGKey(0)
    k_params, k_img = jax.random.split(key)

    params = init_params(k_params)
    prepared = prepare_params(params)   # one-time weight cast/reshape

    # Small MNIST-like batch: (batch=8, channels=1, 28, 28), NCHW like PyTorch.
    img = jax.random.normal(k_img, (8, 1, 28, 28), dtype=jnp.float32)

    logits = discriminator_forward(img, prepared)
    jax.block_until_ready(logits)

    # Cross-check against a plain-JAX f32 reference of the same math
    # (dropout = identity).  Tolerance is loose to cover bf16 matmul inputs.
    x = img.reshape(img.shape[0], -1)
    w1, b1, w2, b2, w3, b3 = params
    h1 = x @ w1 + b1
    h1 = jnp.where(h1 > 0, h1, 0.2 * h1)
    h2 = h1 @ w2 + b2
    h2 = jnp.where(h2 > 0, h2, 0.2 * h2)
    ref = h2 @ w3 + b3

    assert logits.shape == (8, 1)
    assert jnp.allclose(logits, ref, atol=5e-2, rtol=5e-2), (
        float(jnp.max(jnp.abs(logits - ref))))

    print("KERNEL_OK")
</pallas_src>

<mosaic_0001>
module attributes {stable_mosaic.version = 11 : i64} {
  func.func @_discriminator_kernel(%arg0: i32, %arg1: memref<8x784xf32, #tpu.memory_space<vmem>>, %arg2: memref<784x512xbf16, #tpu.memory_space<vmem>>, %arg3: memref<1x512xf32, #tpu.memory_space<vmem>>, %arg4: memref<512x256xbf16, #tpu.memory_space<vmem>>, %arg5: memref<1x256xf32, #tpu.memory_space<vmem>>, %arg6: memref<1x256xf32, #tpu.memory_space<vmem>>, %arg7: memref<1xf32, #tpu.memory_space<smem>>, %arg8: memref<8x1xf32, #tpu.memory_space<vmem>>) attributes {dimension_semantics = [#tpu.dimension_semantics<parallel>], iteration_bounds = array<i64: 1>, scalar_prefetch = 0 : i64, scratch_operands = 0 : i64, tpu.core_type = #tpu.core_type<tc>, window_params = [{transform_indices = @transform_0, window_bounds = array<i64: 8, 784>}, {pipeline_mode = #tpu.pipeline_mode<synchronous>, transform_indices = @transform_1, window_bounds = array<i64: 784, 512>}, {pipeline_mode = #tpu.pipeline_mode<synchronous>, transform_indices = @transform_2, window_bounds = array<i64: 1, 512>}, {pipeline_mode = #tpu.pipeline_mode<synchronous>, transform_indices = @transform_3, window_bounds = array<i64: 512, 256>}, {pipeline_mode = #tpu.pipeline_mode<synchronous>, transform_indices = @transform_4, window_bounds = array<i64: 1, 256>}, {pipeline_mode = #tpu.pipeline_mode<synchronous>, transform_indices = @transform_5, window_bounds = array<i64: 1, 256>}, {transform_indices = @transform_6, window_bounds = array<i64: 1>}, {transform_indices = @transform_7, window_bounds = array<i64: 8, 1>}]} {
    %c0 = arith.constant 0 : index
    %c0_0 = arith.constant 0 : index
    %0 = vector.load %arg1[%c0, %c0_0] : memref<8x784xf32, #tpu.memory_space<vmem>>, vector<8x784xf32>
    %1 = arith.truncf %0 : vector<8x784xf32> to vector<8x784xbf16>
    %c0_1 = arith.constant 0 : index
    %c0_2 = arith.constant 0 : index
    %2 = vector.load %arg2[%c0_1, %c0_2] : memref<784x512xbf16, #tpu.memory_space<vmem>>, vector<784x512xbf16>
    %cst = arith.constant dense<0.000000e+00> : vector<8x512xf32>
    %3 = tpu.matmul %1, %2, %cst {dimension_numbers = #tpu.dot_dimension_numbers<[1], [0], [0], [1], [0, 0, 1, 1], [], []>} : vector<8x784xbf16>, vector<784x512xbf16>, vector<8x512xf32> -> vector<8x512xf32>
    %c0_3 = arith.constant 0 : index
    %c0_4 = arith.constant 0 : index
    %4 = vector.load %arg3[%c0_3, %c0_4] : memref<1x512xf32, #tpu.memory_space<vmem>>, vector<1x512xf32>
    %5 = vector.broadcast %4 : vector<1x512xf32> to vector<8x512xf32>
    %6 = arith.addf %3, %5 : vector<8x512xf32>
    %cst_5 = arith.constant 2.000000e-01 : f32
    %7 = vector.broadcast %cst_5 : f32 to vector<8x512xf32>
    %8 = arith.mulf %7, %6 : vector<8x512xf32>
    %9 = arith.maximumf %6, %8 : vector<8x512xf32>
    %10 = arith.truncf %9 : vector<8x512xf32> to vector<8x512xbf16>
    %c0_6 = arith.constant 0 : index
    %c0_7 = arith.constant 0 : index
    %11 = vector.load %arg4[%c0_6, %c0_7] : memref<512x256xbf16, #tpu.memory_space<vmem>>, vector<512x256xbf16>
    %cst_8 = arith.constant dense<0.000000e+00> : vector<8x256xf32>
    %12 = tpu.matmul %10, %11, %cst_8 {dimension_numbers = #tpu.dot_dimension_numbers<[1], [0], [0], [1], [0, 0, 1, 1], [], []>} : vector<8x512xbf16>, vector<512x256xbf16>, vector<8x256xf32> -> vector<8x256xf32>
    %c0_9 = arith.constant 0 : index
    %c0_10 = arith.constant 0 : index
    %13 = vector.load %arg5[%c0_9, %c0_10] : memref<1x256xf32, #tpu.memory_space<vmem>>, vector<1x256xf32>
    %14 = vector.broadcast %13 : vector<1x256xf32> to vector<8x256xf32>
    %15 = arith.addf %12, %14 : vector<8x256xf32>
    %cst_11 = arith.constant 2.000000e-01 : f32
    %16 = vector.broadcast %cst_11 : f32 to vector<8x256xf32>
    %17 = arith.mulf %16, %15 : vector<8x256xf32>
    %18 = arith.maximumf %15, %17 : vector<8x256xf32>
    %c0_12 = arith.constant 0 : index
    %c0_13 = arith.constant 0 : index
    %19 = vector.load %arg6[%c0_12, %c0_13] : memref<1x256xf32, #tpu.memory_space<vmem>>, vector<1x256xf32>
    %20 = vector.broadcast %19 : vector<1x256xf32> to vector<8x256xf32>
    %21 = arith.mulf %18, %20 : vector<8x256xf32>
    %cst_14 = arith.constant dense<0.000000e+00> : vector<8xf32>
    %22 = vector.multi_reduction <add>, %21, %cst_14 [1] : vector<8x256xf32> to vector<8xf32>
    %23 = vector.shape_cast %22 : vector<8xf32> to vector<8x1xf32>
    %c0_15 = arith.constant 0 : index
    %24 = memref.load %arg7[%c0_15] : memref<1xf32, #tpu.memory_space<smem>>
    %25 = vector.broadcast %24 : f32 to vector<8x1xf32>
    %26 = arith.addf %23, %25 : vector<8x1xf32>
    %c0_16 = arith.constant 0 : index
    %c0_17 = arith.constant 0 : index
    %27 = vector.load %arg8[%c0_16, %c0_17] : memref<8x1xf32, #tpu.memory_space<vmem>>, vector<8x1xf32>
    tpu.vector_store %arg8[%c0_16, %c0_17], %26 {strides = array<i32>} : memref<8x1xf32, #tpu.memory_space<vmem>>, vector<8x1xf32>,
    return
  }
  func.func @transform_0(%arg0: i32) -> (i32, i32) {
    %c0_i32 = arith.constant 0 : i32
    %c0_i32_0 = arith.constant 0 : i32
    return %arg0, %c0_i32 : i32, i32
  }
  func.func @transform_1(%arg0: i32) -> (i32, i32) {
    %c0_i32 = arith.constant 0 : i32
    %c0_i32_0 = arith.constant 0 : i32
    %c0_i32_1 = arith.constant 0 : i32
    return %c0_i32, %c0_i32_0 : i32, i32
  }
  func.func @transform_2(%arg0: i32) -> (i32, i32) {
    %c0_i32 = arith.constant 0 : i32
    %c0_i32_0 = arith.constant 0 : i32
    %c0_i32_1 = arith.constant 0 : i32
    return %c0_i32, %c0_i32_0 : i32, i32
  }
  func.func @transform_3(%arg0: i32) -> (i32, i32) {
    %c0_i32 = arith.constant 0 : i32
    %c0_i32_0 = arith.constant 0 : i32
    %c0_i32_1 = arith.constant 0 : i32
    return %c0_i32, %c0_i32_0 : i32, i32
  }
  func.func @transform_4(%arg0: i32) -> (i32, i32) {
    %c0_i32 = arith.constant 0 : i32
    %c0_i32_0 = arith.constant 0 : i32
    %c0_i32_1 = arith.constant 0 : i32
    return %c0_i32, %c0_i32_0 : i32, i32
  }
  func.func @transform_5(%arg0: i32) -> (i32, i32) {
    %c0_i32 = arith.constant 0 : i32
    %c0_i32_0 = arith.constant 0 : i32
    %c0_i32_1 = arith.constant 0 : i32
    return %c0_i32, %c0_i32_0 : i32, i32
  }
  func.func @transform_6(%arg0: i32) -> i32 {
    %c0_i32 = arith.constant 0 : i32
    %c0_i32_0 = arith.constant 0 : i32
    return %c0_i32 : i32
  }
  func.func @transform_7(%arg0: i32) -> (i32, i32) {
    %c0_i32 = arith.constant 0 : i32
    %c0_i32_0 = arith.constant 0 : i32
    return %arg0, %c0_i32 : i32, i32
  }
}

</mosaic_0001>

<bundles_post_ra>
// kernel: discriminator_forward.1
= control target key start
LH: loop header
LB: loop body
LE: loop exit
PB: predicated region body
PF: predicated region fallthrough
CT: control target
= control target key end

     0   :  { %13 = vsyncpa [#allocation4], 0  ;;  %s2819_s24 = smov [#allocation3]   ;;  %s3157_s0 = inlined_call_operand.vmem [shape: f32[8,784], index: 0, kind: input, shape index: {}]   ;;  %s3158_s1 = inlined_call_operand.hbm [shape: bf16[784,512], index: 1, kind: input, shape index: {}]   ;;  %s3159_s2 = inlined_call_operand.vmem [shape: f32[1,512], index: 2, kind: input, shape index: {}]   ;;  %s3160_s3 = inlined_call_operand.vmem [shape: bf16[512,256], index: 3, kind: input, shape index: {}]   ;;  %s3161_s4 = inlined_call_operand.vmem [shape: f32[1,256], index: 4, kind: input, shape index: {}]   ;;  %s3162_s5 = inlined_call_operand.vmem [shape: f32[1,256], index: 5, kind: input, shape index: {}]   ;;  %s3163_s6 = inlined_call_operand.<no memory space> [shape: f32[1], index: 6, kind: input, shape index: {}]   ;;  %s3164_s7 = inlined_call_operand.vmem [shape: f32[8,1], index: 7, kind: output, shape index: {}]  }
   0x1   :  { %s21_s25 = sshll.u32 %s2819_s24, 4  ;;  %s2795_s28 = scalar_lea.hbm %s3158_s1, 25088  ;;  %s22_s25 = int_to_ptr.vmem [resolvable:$true] %s21_s25 }
   0x2   :  { %p2796_p0 = scmp.ne.s32.totalorder %s3158_s1, %s2795_s28  ;;  %p2799_p1 = scmp.lt.u32.totalorder %s2795_s28, %s3158_s1 }
   0x4   :  { %p2801_p2 = pnand %p2799_p1, %p2796_p0 }
   0x6   :  { %2804 = shalt.err (!%p2801_p2)
}
   0x7   :  { %s2805_s10 = scalar_lea.vmem %s22_s25, 25088  ;;  %p2810_p4 = scmp.lt.s32.totalorder %s22_s25, %s22_s25 }
   0x8   :  { %p2806_p3 = scmp.ne.s32.totalorder %s22_s25, %s2805_s10  ;;  %p2811_p5 = scmp.lt.s32.totalorder %s2805_s10, %s2805_s10 }
   0xa   :  { %p2812_p6 = por %p2811_p5, %p2810_p4 }
   0xc   :  { %p2813_p7 = pnand %p2812_p6, %p2806_p3 }
   0xe   :  { %2816 = shalt.err (!%p2813_p7)
}
   0xf   :  { %s2820_s11 = smov 256   ;;  %s2821_s12 = smov 16  }
  0x10   :  { %27 = dma.hbm_to_vmem [thread:$0]  %s3158_s1, 25088, %s22_s25, [#allocation4], %s2820_s11, %s2820_s11, %s2821_s12  }
  0x11   :  { %2817 = dma.done.wait [#allocation4], 25088  }
  0x12   :  { %2818 = vsyncadd [#allocation4], 4294942208  ;;  %v2405_v0 = vld [vmem:[#allocation3 + $0x4] ss:$16 sps:$4 sm:$0xff]   ;;  %v2409_v2 = vld [vmem:[#allocation3] ss:$16 sps:$4 sm:$0xff]  }
  0x13   :  { %v2407_v1 = vld [vmem:[#allocation3 + $0x204] ss:$16 sps:$4 sm:$0xff]   ;;  %1258 = vmatprep.subr.bf16.mxu1 %v2405_v0  ;;  %v2410_v3 = vld [vmem:[#allocation3 + $0x200] ss:$16 sps:$4 sm:$0xff]   ;;  %v43_v46 = vld [vmem:[%s3157_s0 + $0x8] sm:$0xff]  ;;  %vm1254_vm0 = vcmask 130048  }
  0x14   :  { %1299 = vmatprep.subr.bf16.mxu0 %v2407_v1  ;;  %v2411_v4 = vld [vmem:[#allocation3 + $0x24] ss:$16 sps:$4 sm:$0xff]   ;;  %1259 = vmatpush1.bf16.msra.mxu1 %v2409_v2  ;;  %v2415_v6 = vld [vmem:[#allocation3 + $0x20] ss:$16 sps:$4 sm:$0xff]   ;;  %v2878_v48 = vpack.c.bf16 %v43_v46, %v43_v46  ;;  %v45_v49 = vld [vmem:[%s3157_s0 + $0x18] sm:$0xff]  ;;  %vm2100_vm1 = vcmask 7168  }
  0x15   :  { %1300 = vmatpush1.bf16.msra.mxu0 %v2410_v3  ;;  %v2413_v5 = vld [vmem:[#allocation3 + $0x224] ss:$16 sps:$4 sm:$0xff]   ;;  %1260 = vmatprep.subr.bf16.mxu1 %v2411_v4  ;;  %v2416_v7 = vld [vmem:[#allocation3 + $0x220] ss:$16 sps:$4 sm:$0xff]   ;;  %v2883_v52 = vpack.c.bf16 %v45_v49, %v45_v49  ;;  %v2558_v49 = vld [vmem:[#allocation3 + $0x128] ss:$16 sps:$4 sm:$0xff]  }
  0x16   :  { %1301 = vmatprep.subr.bf16.mxu0 %v2413_v5  ;;  %v2417_v8 = vld [vmem:[#allocation3 + $0x44] ss:$16 sps:$4 sm:$0xff]   ;;  %v2421_v10 = vld [vmem:[#allocation3 + $0x40] ss:$16 sps:$4 sm:$0xff]   ;;  %1290 = vmatprep.mubr.bf16.mxu1 %v2878_v48 }
  0x17   :  { %v2419_v9 = vld [vmem:[#allocation3 + $0x244] ss:$16 sps:$4 sm:$0xff]   ;;  %v2422_v11 = vld [vmem:[#allocation3 + $0x240] ss:$16 sps:$4 sm:$0xff]   ;;  %1331 = vmatprep.mubr.bf16.mxu0 %v2883_v52 }
  0x18   :  { %1261 = vmatpush1.bf16.msra.mxu1 %v2415_v6  ;;  %v2423_v12 = vld [vmem:[#allocation3 + $0x64] ss:$16 sps:$4 sm:$0xff]   ;;  %v2427_v14 = vld [vmem:[#allocation3 + $0x60] ss:$16 sps:$4 sm:$0xff]  }
  0x19   :  { %1302 = vmatpush1.bf16.msra.mxu0 %v2416_v7  ;;  %1262 = vmatprep.subr.bf16.mxu1 %v2417_v8  ;;  %v2425_v13 = vld [vmem:[#allocation3 + $0x264] ss:$16 sps:$4 sm:$0xff]   ;;  %v2428_v15 = vld [vmem:[#allocation3 + $0x260] ss:$16 sps:$4 sm:$0xff]   ;;  %v2506_v7 = vld [vmem:[#allocation3 + $0xc] ss:$16 sps:$4 sm:$0xff]  }
  0x1a   :  { %1303 = vmatprep.subr.bf16.mxu0 %v2419_v9  ;;  %v2429_v16 = vld [vmem:[#allocation3 + $0x84] ss:$16 sps:$4 sm:$0xff]   ;;  %v2433_v18 = vld [vmem:[#allocation3 + $0x80] ss:$16 sps:$4 sm:$0xff]  }
  0x1b   :  { %v2431_v17 = vld [vmem:[#allocation3 + $0x284] ss:$16 sps:$4 sm:$0xff]   ;;  %v2434_v19 = vld [vmem:[#allocation3 + $0x280] ss:$16 sps:$4 sm:$0xff]  }
  0x1c   :  { %1263 = vmatpush1.bf16.msra.mxu1 %v2421_v10  ;;  %v2435_v20 = vld [vmem:[#allocation3 + $0xa4] ss:$16 sps:$4 sm:$0xff]   ;;  %v2439_v22 = vld [vmem:[#allocation3 + $0xa0] ss:$16 sps:$4 sm:$0xff]   ;;  %v2504_v10 = vld [vmem:[#allocation3 + $0x8] ss:$16 sps:$4 sm:$0xff]  }
  0x1d   :  { %1304 = vmatpush1.bf16.msra.mxu0 %v2422_v11  ;;  %1264 = vmatprep.subr.bf16.mxu1 %v2423_v12  ;;  %v2437_v21 = vld [vmem:[#allocation3 + $0x2a4] ss:$16 sps:$4 sm:$0xff]   ;;  %v2440_v23 = vld [vmem:[#allocation3 + $0x2a0] ss:$16 sps:$4 sm:$0xff]  }
  0x1e   :  { %1305 = vmatprep.subr.bf16.mxu0 %v2425_v13  ;;  %v2441_v24 = vld [vmem:[#allocation3 + $0xc4] ss:$16 sps:$4 sm:$0xff]   ;;  %v2445_v26 = vld [vmem:[#allocation3 + $0xc0] ss:$16 sps:$4 sm:$0xff]   ;;  %v2512_v13 = vld [vmem:[#allocation3 + $0x2c] ss:$16 sps:$4 sm:$0xff]  }
  0x1f   :  { %v2443_v25 = vld [vmem:[#allocation3 + $0x2c4] ss:$16 sps:$4 sm:$0xff]   ;;  %v2446_v27 = vld [vmem:[#allocation3 + $0x2c0] ss:$16 sps:$4 sm:$0xff]  }
  0x20   :  { %1265 = vmatpush1.bf16.msra.mxu1 %v2427_v14  ;;  %v2447_v28 = vld [vmem:[#allocation3 + $0xe4] ss:$16 sps:$4 sm:$0xff]   ;;  %v2451_v30 = vld [vmem:[#allocation3 + $0xe0] ss:$16 sps:$4 sm:$0xff]  }
  0x21   :  { %1306 = vmatpush1.bf16.msra.mxu0 %v2428_v15  ;;  %1266 = vmatprep.subr.bf16.mxu1 %v2429_v16  ;;  %v2449_v29 = vld [vmem:[#allocation3 + $0x2e4] ss:$16 sps:$4 sm:$0xff]   ;;  %v2452_v31 = vld [vmem:[#allocation3 + $0x2e0] ss:$16 sps:$4 sm:$0xff]   ;;  %v2510_v15 = vld [vmem:[#allocation3 + $0x28] ss:$16 sps:$4 sm:$0xff]  }
  0x22   :  { %1307 = vmatprep.subr.bf16.mxu0 %v2431_v17  ;;  %v2453_v32 = vld [vmem:[#allocation3 + $0x104] ss:$16 sps:$4 sm:$0xff]   ;;  %v2457_v34 = vld [vmem:[#allocation3 + $0x100] ss:$16 sps:$4 sm:$0xff]   ;;  %v2518_v17 = vld [vmem:[#allocation3 + $0x4c] ss:$16 sps:$4 sm:$0xff]  }
  0x23   :  { %v2455_v33 = vld [vmem:[#allocation3 + $0x304] ss:$16 sps:$4 sm:$0xff]   ;;  %v2458_v35 = vld [vmem:[#allocation3 + $0x300] ss:$16 sps:$4 sm:$0xff]  }
  0x24   :  { %1267 = vmatpush1.bf16.msra.mxu1 %v2433_v18  ;;  %v2459_v36 = vld [vmem:[#allocation3 + $0x124] ss:$16 sps:$4 sm:$0xff]   ;;  %v2463_v38 = vld [vmem:[#allocation3 + $0x120] ss:$16 sps:$4 sm:$0xff]  }
  0x25   :  { %1308 = vmatpush1.bf16.msra.mxu0 %v2434_v19  ;;  %1268 = vmatprep.subr.bf16.mxu1 %v2435_v20  ;;  %v2461_v37 = vld [vmem:[#allocation3 + $0x324] ss:$16 sps:$4 sm:$0xff]   ;;  %v2464_v39 = vld [vmem:[#allocation3 + $0x320] ss:$16 sps:$4 sm:$0xff]   ;;  %v2516_v19 = vld [vmem:[#allocation3 + $0x48] ss:$16 sps:$4 sm:$0xff]  }
  0x26   :  { %1309 = vmatprep.subr.bf16.mxu0 %v2437_v21  ;;  %v2465_v40 = vld [vmem:[#allocation3 + $0x144] ss:$16 sps:$4 sm:$0xff]   ;;  %v2469_v42 = vld [vmem:[#allocation3 + $0x140] ss:$16 sps:$4 sm:$0xff]   ;;  %v2524_v21 = vld [vmem:[#allocation3 + $0x6c] ss:$16 sps:$4 sm:$0xff]  }
  0x27   :  { %v2467_v41 = vld [vmem:[#allocation3 + $0x344] ss:$16 sps:$4 sm:$0xff]   ;;  %v2470_v43 = vld [vmem:[#allocation3 + $0x340] ss:$16 sps:$4 sm:$0xff]  }
  0x28   :  { %1269 = vmatpush1.bf16.msra.mxu1 %v2439_v22  ;;  %v2471_v44 = vld [vmem:[#allocation3 + $0x164] ss:$16 sps:$4 sm:$0xff]   ;;  %v2475_v47 = vld [vmem:[#allocation3 + $0x160] ss:$16 sps:$4 sm:$0xff]  }
  0x29   :  { %1310 = vmatpush1.bf16.msra.mxu0 %v2440_v23  ;;  %1270 = vmatprep.subr.bf16.mxu1 %v2441_v24  ;;  %v2473_v45 = vld [vmem:[#allocation3 + $0x364] ss:$16 sps:$4 sm:$0xff]   ;;  %v2476_v50 = vld [vmem:[#allocation3 + $0x360] ss:$16 sps:$4 sm:$0xff]   ;;  %v2522_v23 = vld [vmem:[#allocation3 + $0x68] ss:$16 sps:$4 sm:$0xff]  }
  0x2a   :  { %1311 = vmatprep.subr.bf16.mxu0 %v2443_v25  ;;  %v2477_v51 = vld [vmem:[#allocation3 + $0x184] ss:$16 sps:$4 sm:$0xff]   ;;  %v2481_v54 = vld [vmem:[#allocation3 + $0x180] ss:$16 sps:$4 sm:$0xff]   ;;  %v2530_v25 = vld [vmem:[#allocation3 + $0x8c] ss:$16 sps:$4 sm:$0xff]  }
  0x2b   :  { %v2479_v53 = vld [vmem:[#allocation3 + $0x384] ss:$16 sps:$4 sm:$0xff]   ;;  %v2482_v55 = vld [vmem:[#allocation3 + $0x380] ss:$16 sps:$4 sm:$0xff]  }
  0x2c   :  { %1271 = vmatpush1.bf16.msra.mxu1 %v2445_v26  ;;  %v2483_v56 = vld [vmem:[#allocation3 + $0x1a4] ss:$16 sps:$4 sm:$0xff]   ;;  %v2487_v58 = vld [vmem:[#allocation3 + $0x1a0] ss:$16 sps:$4 sm:$0xff]  }
  0x2d   :  { %1312 = vmatpush1.bf16.msra.mxu0 %v2446_v27  ;;  %1272 = vmatprep.subr.bf16.mxu1 %v2447_v28  ;;  %v2485_v57 = vld [vmem:[#allocation3 + $0x3a4] ss:$16 sps:$4 sm:$0xff]   ;;  %v2488_v59 = vld [vmem:[#allocation3 + $0x3a0] ss:$16 sps:$4 sm:$0xff]   ;;  %v2528_v27 = vld [vmem:[#allocation3 + $0x88] ss:$16 sps:$4 sm:$0xff]  }
  0x2e   :  { %1313 = vmatprep.subr.bf16.mxu0 %v2449_v29  ;;  %v2489_v60 = vld [vmem:[#allocation3 + $0x1c4] ss:$16 sps:$4 sm:$0xff]   ;;  %v2493_v62 = vld [vmem:[#allocation3 + $0x1c0] ss:$16 sps:$4 sm:$0xff]   ;;  %v2536_v29 = vld [vmem:[#allocation3 + $0xac] ss:$16 sps:$4 sm:$0xff]  }
  0x2f   :  { %v2491_v61 = vld [vmem:[#allocation3 + $0x3c4] ss:$16 sps:$4 sm:$0xff]   ;;  %v2494_v63 = vld [vmem:[#allocation3 + $0x3c0] ss:$16 sps:$4 sm:$0xff]  }
  0x30   :  { %1273 = vmatpush1.bf16.msra.mxu1 %v2451_v30  ;;  %v2495_v0 = vld [vmem:[#allocation3 + $0x1e4] ss:$16 sps:$4 sm:$0xff]   ;;  %v2499_v2 = vld [vmem:[#allocation3 + $0x1e0] ss:$16 sps:$4 sm:$0xff]  }
  0x31   :  { %1314 = vmatpush1.bf16.msra.mxu0 %v2452_v31  ;;  %1274 = vmatprep.subr.bf16.mxu1 %v2453_v32  ;;  %v2497_v1 = vld [vmem:[#allocation3 + $0x3e4] ss:$16 sps:$4 sm:$0xff]   ;;  %v2500_v3 = vld [vmem:[#allocation3 + $0x3e0] ss:$16 sps:$4 sm:$0xff]   ;;  %v2534_v31 = vld [vmem:[#allocation3 + $0xa8] ss:$16 sps:$4 sm:$0xff]  }
  0x32   :  { %1315 = vmatprep.subr.bf16.mxu0 %v2455_v33  ;;  %v42_v4 = vld [vmem:[%s3157_s0] sm:$0xff]  ;;  %v44_v6 = vld [vmem:[%s3157_s0 + $0x10] sm:$0xff]  ;;  %v2542_v33 = vld [vmem:[#allocation3 + $0xcc] ss:$16 sps:$4 sm:$0xff]  }
  0x33   :  { %v2503_v5 = vld [vmem:[#allocation3 + $0x404] ss:$16 sps:$4 sm:$0xff]   ;;  %v2893_v8 = vpack.c.bf16 %v42_v4, %v42_v4  ;;  %v2501_v9 = vld [vmem:[#allocation3 + $0x400] ss:$16 sps:$4 sm:$0xff]   ;;  %v2895_v11 = vpack.c.bf16 %v44_v6, %v44_v6  ;;  %v2590_v4 = vld [vmem:[#allocation3 + $0x1cc] ss:$16 sps:$4 sm:$0xff]  }
  0x34   :  { %1275 = vmatpush1.bf16.msra.mxu1 %v2457_v34  ;;  %v2509_v12 = vld [vmem:[#allocation3 + $0x424] ss:$16 sps:$4 sm:$0xff]   ;;  %v2507_v14 = vld [vmem:[#allocation3 + $0x420] ss:$16 sps:$4 sm:$0xff]   ;;  %v47_v34 = vld [vmem:[%s3157_s0 + $0x28] sm:$0xff] }
  0x35   :  { %1316 = vmatpush1.bf16.msra.mxu0 %v2458_v35  ;;  %1276 = vmatprep.subr.bf16.mxu1 %v2459_v36  ;;  %v2515_v16 = vld [vmem:[#allocation3 + $0x444] ss:$16 sps:$4 sm:$0xff]   ;;  %v2513_v18 = vld [vmem:[#allocation3 + $0x440] ss:$16 sps:$4 sm:$0xff]   ;;  %v2903_v35 = vpack.c.bf16 %v47_v34, %v47_v34  ;;  %v2588_v6 = vld [vmem:[#allocation3 + $0x1c8] ss:$16 sps:$4 sm:$0xff]  }
  0x36   :  { %1317 = vmatprep.subr.bf16.mxu0 %v2461_v37  ;;  %v2521_v20 = vld [vmem:[#allocation3 + $0x464] ss:$16 sps:$4 sm:$0xff]   ;;  %v2519_v22 = vld [vmem:[#allocation3 + $0x460] ss:$16 sps:$4 sm:$0xff]   ;;  %v2540_v37 = vld [vmem:[#allocation3 + $0xc8] ss:$16 sps:$4 sm:$0xff]  }
  0x37   :  { %v2527_v24 = vld [vmem:[#allocation3 + $0x484] ss:$16 sps:$4 sm:$0xff]   ;;  %v2525_v26 = vld [vmem:[#allocation3 + $0x480] ss:$16 sps:$4 sm:$0xff]  }
  0x38   :  { %1277 = vmatpush1.bf16.msra.mxu1 %v2463_v38  ;;  %v2533_v28 = vld [vmem:[#allocation3 + $0x4a4] ss:$16 sps:$4 sm:$0xff]   ;;  %v2531_v30 = vld [vmem:[#allocation3 + $0x4a0] ss:$16 sps:$4 sm:$0xff]  }
  0x39   :  { %1318 = vmatpush1.bf16.msra.mxu0 %v2464_v39  ;;  %1278 = vmatprep.subr.bf16.mxu1 %v2465_v40  ;;  %v2539_v32 = vld [vmem:[#allocation3 + $0x4c4] ss:$16 sps:$4 sm:$0xff]   ;;  %v2537_v36 = vld [vmem:[#allocation3 + $0x4c0] ss:$16 sps:$4 sm:$0xff]   ;;  %v2548_v39 = vld [vmem:[#allocation3 + $0xec] ss:$16 sps:$4 sm:$0xff]  }
  0x3a   :  { %1319 = vmatprep.subr.bf16.mxu0 %v2467_v41  ;;  %v2545_v38 = vld [vmem:[#allocation3 + $0x4e4] ss:$16 sps:$4 sm:$0xff]   ;;  %v2543_v40 = vld [vmem:[#allocation3 + $0x4e0] ss:$16 sps:$4 sm:$0xff]   ;;  %v2546_v41 = vld [vmem:[#allocation3 + $0xe8] ss:$16 sps:$4 sm:$0xff]  }
  0x3b   :  { %v2557_v46 = vld [vmem:[#allocation3 + $0x524] ss:$16 sps:$4 sm:$0xff]  }
  0x3c   :  { %1279 = vmatpush1.bf16.msra.mxu1 %v2469_v42  ;;  %v2551_v42 = vld [vmem:[#allocation3 + $0x504] ss:$16 sps:$4 sm:$0xff]  }
  0x3d   :  { %1320 = vmatpush1.bf16.msra.mxu0 %v2470_v43  ;;  %1280 = vmatprep.subr.bf16.mxu1 %v2471_v44  ;;  %v2554_v43 = vld [vmem:[#allocation3 + $0x10c] ss:$16 sps:$4 sm:$0xff]   ;;  %v2549_v44 = vld [vmem:[#allocation3 + $0x500] ss:$16 sps:$4 sm:$0xff]  }
  0x3e   :  { %1321 = vmatprep.subr.bf16.mxu0 %v2473_v45  ;;  %v2552_v45 = vld [vmem:[#allocation3 + $0x108] ss:$16 sps:$4 sm:$0xff]   ;;  %v2701_v34 = vld [vmem:[%s3160_s3 + $0x4] ss:$8 sps:$4 sm:$0xff]  }
  0x40   :  { %1281 = vmatpush1.bf16.msra.mxu1 %v2475_v47  ;;  %v2560_v47 = vld [vmem:[#allocation3 + $0x12c] ss:$16 sps:$4 sm:$0xff]  }
  0x41   :  { %1322 = vmatpush1.bf16.msra.mxu0 %v2476_v50  ;;  %1282 = vmatprep.subr.bf16.mxu1 %v2477_v51  ;;  %v2563_v50 = vld [vmem:[#allocation3 + $0x544] ss:$16 sps:$4 sm:$0xff]   ;;  %v2566_v51 = vld [vmem:[#allocation3 + $0x14c] ss:$16 sps:$4 sm:$0xff]  }
  0x42   :  { %1323 = vmatprep.subr.bf16.mxu0 %v2479_v53  ;;  %v2561_v53 = vld [vmem:[#allocation3 + $0x540] ss:$16 sps:$4 sm:$0xff]  }
  0x44   :  { %1283 = vmatpush1.bf16.msra.mxu1 %v2481_v54  ;;  %v2564_v54 = vld [vmem:[#allocation3 + $0x148] ss:$16 sps:$4 sm:$0xff]  }
  0x45   :  { %1324 = vmatpush1.bf16.msra.mxu0 %v2482_v55  ;;  %1284 = vmatprep.subr.bf16.mxu1 %v2483_v56  ;;  %v2569_v55 = vld [vmem:[#allocation3 + $0x564] ss:$16 sps:$4 sm:$0xff]   ;;  %v2572_v56 = vld [vmem:[#allocation3 + $0x16c] ss:$16 sps:$4 sm:$0xff]  }
  0x46   :  { %1325 = vmatprep.subr.bf16.mxu0 %v2485_v57  ;;  %v2567_v57 = vld [vmem:[#allocation3 + $0x560] ss:$16 sps:$4 sm:$0xff]  }
  0x48   :  { %1285 = vmatpush1.bf16.msra.mxu1 %v2487_v58  ;;  %v2570_v58 = vld [vmem:[#allocation3 + $0x168] ss:$16 sps:$4 sm:$0xff]  }
  0x49   :  { %1326 = vmatpush1.bf16.msra.mxu0 %v2488_v59  ;;  %1286 = vmatprep.subr.bf16.mxu1 %v2489_v60  ;;  %v2575_v59 = vld [vmem:[#allocation3 + $0x584] ss:$16 sps:$4 sm:$0xff]   ;;  %v2578_v60 = vld [vmem:[#allocation3 + $0x18c] ss:$16 sps:$4 sm:$0xff]  }
  0x4a   :  { %1327 = vmatprep.subr.bf16.mxu0 %v2491_v61  ;;  %v2573_v61 = vld [vmem:[#allocation3 + $0x580] ss:$16 sps:$4 sm:$0xff]  }
  0x4c   :  { %1287 = vmatpush1.bf16.msra.mxu1 %v2493_v62  ;;  %v2576_v62 = vld [vmem:[#allocation3 + $0x188] ss:$16 sps:$4 sm:$0xff]  }
  0x4d   :  { %1328 = vmatpush1.bf16.msra.mxu0 %v2494_v63  ;;  %1288 = vmatprep.subr.bf16.mxu1 %v2495_v0  ;;  %v2581_v63 = vld [vmem:[#allocation3 + $0x5a4] ss:$16 sps:$4 sm:$0xff]   ;;  %v2584_v0 = vld [vmem:[#allocation3 + $0x1ac] ss:$16 sps:$4 sm:$0xff]  }
  0x4e   :  { %1329 = vmatprep.subr.bf16.mxu0 %v2497_v1  ;;  %v2579_v1 = vld [vmem:[#allocation3 + $0x5a0] ss:$16 sps:$4 sm:$0xff]  }
  0x50   :  { %1289 = vmatpush1.bf16.msra.mxu1 %v2499_v2  ;;  %v2582_v2 = vld [vmem:[#allocation3 + $0x1a8] ss:$16 sps:$4 sm:$0xff]  }
  0x51   :  { %1330 = vmatpush1.bf16.msra.mxu0 %v2500_v3  ;;  %1422 = vmatprep.subr.bf16.mxu1 %v2506_v7  ;;  %v2587_v3 = vld [vmem:[#allocation3 + $0x5c4] ss:$16 sps:$4 sm:$0xff]  }
  0x52   :  { %1340 = vmatprep.subr.bf16.mxu0 %v2503_v5  ;;  %v2585_v5 = vld [vmem:[#allocation3 + $0x5c0] ss:$16 sps:$4 sm:$0xff]   ;;  %v2593_v7 = vld [vmem:[#allocation3 + $0x5e4] ss:$16 sps:$4 sm:$0xff]  }
  0x53   :  { %1291 = vmatmul.mubr.bf16.vlgmr.msra.gmra.mrb[0].mxu1 %v2893_v8 }
  0x54   :  { %1332 = vmatmul.mubr.bf16.vlgmr.msra.gmra.mrb[0].mxu0 %v2895_v11  ;;  %1423 = vmatpush1.bf16.msra.mxu1 %v2504_v10  ;;  %v2591_v10 = vld [vmem:[#allocation3 + $0x5e0] ss:$16 sps:$4 sm:$0xff]  }
  0x55   :  { %1341 = vmatpush1.bf16.msra.mxu0 %v2501_v9  ;;  %1424 = vmatprep.subr.bf16.mxu1 %v2512_v13  ;;  %v2596_v9 = vld [vmem:[#allocation3 + $0x1ec] ss:$16 sps:$4 sm:$0xff]   ;;  %v46_v13 = vld [vmem:[%s3157_s0 + $0x20] sm:$0xff] }
  0x56   :  { %1342 = vmatprep.subr.bf16.mxu0 %v2509_v12  ;;  %1454 = vmatprep.mubr.bf16.mxu1 %v2878_v48  ;;  %v2555_v48 = vld [vmem:[#allocation3 + $0x520] ss:$16 sps:$4 sm:$0xff]   ;;  %v2594_v12 = vld [vmem:[#allocation3 + $0x1e8] ss:$16 sps:$4 sm:$0xff]  }
  0x57   :  { %1372 = vmatprep.mubr.bf16.mxu0 %v2903_v35 }
  0x58   :  { %1425 = vmatpush1.bf16.msra.mxu1 %v2510_v15  ;;  %v2605_v15 = vld [vmem:[#allocation3 + $0x604] ss:$16 sps:$4 sm:$0xff]  }
  0x59   :  { %1343 = vmatpush1.bf16.msra.mxu0 %v2507_v14  ;;  %1426 = vmatprep.subr.bf16.mxu1 %v2518_v17  ;;  %v2599_v14 = vld [vmem:[#allocation3 + $0x20c] ss:$16 sps:$4 sm:$0xff]   ;;  %v2597_v17 = vld [vmem:[#allocation3 + $0x208] ss:$16 sps:$4 sm:$0xff]  }
  0x5a   :  { %1344 = vmatprep.subr.bf16.mxu0 %v2515_v16  ;;  %v2909_v16 = vpack.c.bf16 %v46_v13, %v46_v13  ;;  %v2653_v13 = vld [vmem:[#allocation3 + $0x42c] ss:$16 sps:$4 sm:$0xff]  }
  0x5c   :  { %1427 = vmatpush1.bf16.msra.mxu1 %v2516_v19  ;;  %v2602_v19 = vld [vmem:[#allocation3 + $0x22c] ss:$16 sps:$4 sm:$0xff]  }
  0x5d   :  { %1345 = vmatpush1.bf16.msra.mxu0 %v2513_v18  ;;  %1428 = vmatprep.subr.bf16.mxu1 %v2524_v21  ;;  %v2603_v18 = vld [vmem:[#allocation3 + $0x600] ss:$16 sps:$4 sm:$0xff]   ;;  %v2608_v21 = vld [vmem:[#allocation3 + $0x24c] ss:$16 sps:$4 sm:$0xff]  }
  0x5e   :  { %1346 = vmatprep.subr.bf16.mxu0 %v2521_v20  ;;  %v2600_v20 = vld [vmem:[#allocation3 + $0x228] ss:$16 sps:$4 sm:$0xff]  }
  0x60   :  { %1429 = vmatpush1.bf16.msra.mxu1 %v2522_v23  ;;  %v2606_v23 = vld [vmem:[#allocation3 + $0x248] ss:$16 sps:$4 sm:$0xff]  }
  0x61   :  { %1347 = vmatpush1.bf16.msra.mxu0 %v2519_v22  ;;  %1430 = vmatprep.subr.bf16.mxu1 %v2530_v25  ;;  %v2822_v22 = vmov 0   ;;  %v2611_v25 = vld [vmem:[#allocation3 + $0x26c] ss:$16 sps:$4 sm:$0xff]  }
  0x62   :  { %1348 = vmatprep.subr.bf16.mxu0 %v2527_v24  ;;  %v48_v24 = vld [vmem:[%s3157_s0 + $0x30] sm:$0xff] }
  0x64   :  { %1431 = vmatpush1.bf16.msra.mxu1 %v2528_v27  ;;  %v2614_v27 = vld [vmem:[#allocation3 + $0x28c] ss:$16 sps:$4 sm:$0xff]  }
  0x65   :  { %1349 = vmatpush1.bf16.msra.mxu0 %v2525_v26  ;;  %1432 = vmatprep.subr.bf16.mxu1 %v2536_v29  ;;  %v2609_v26 = vld [vmem:[#allocation3 + $0x268] ss:$16 sps:$4 sm:$0xff]   ;;  %v2617_v29 = vld [vmem:[#allocation3 + $0x2ac] ss:$16 sps:$4 sm:$0xff]  }
  0x66   :  { %1350 = vmatprep.subr.bf16.mxu0 %v2533_v28  ;;  %v2612_v28 = vld [vmem:[#allocation3 + $0x288] ss:$16 sps:$4 sm:$0xff]  }
  0x68   :  { %1433 = vmatpush1.bf16.msra.mxu1 %v2534_v31  ;;  %v2620_v31 = vld [vmem:[#allocation3 + $0x2cc] ss:$16 sps:$4 sm:$0xff]  }
  0x69   :  { %1351 = vmatpush1.bf16.msra.mxu0 %v2531_v30  ;;  %1434 = vmatprep.subr.bf16.mxu1 %v2542_v33  ;;  %v2615_v30 = vld [vmem:[#allocation3 + $0x2a8] ss:$16 sps:$4 sm:$0xff]  }
  0x6a   :  { %1352 = vmatprep.subr.bf16.mxu0 %v2539_v32  ;;  %v2623_v32 = vld [vmem:[#allocation3 + $0x2ec] ss:$16 sps:$4 sm:$0xff]   ;;  %v2699_v33 = vld [vmem:[%s3160_s3] ss:$8 sps:$4 sm:$0xff]  }
  0x6c   :  { %1435 = vmatpush1.bf16.msra.mxu1 %v2540_v37  ;;  %v2621_v37 = vld [vmem:[#allocation3 + $0x2e8] ss:$16 sps:$4 sm:$0xff]  }
  0x6d   :  { %1353 = vmatpush1.bf16.msra.mxu0 %v2537_v36  ;;  %1436 = vmatprep.subr.bf16.mxu1 %v2548_v39  ;;  %v2704_v36 = vld [vmem:[%s3160_s3 + $0x14] ss:$8 sps:$4 sm:$0xff]  }
  0x6e   :  { %1354 = vmatprep.subr.bf16.mxu0 %v2545_v38  ;;  %v2702_v38 = vld [vmem:[%s3160_s3 + $0x10] ss:$8 sps:$4 sm:$0xff]   ;;  %v2626_v39 = vld [vmem:[#allocation3 + $0x30c] ss:$16 sps:$4 sm:$0xff]  }
  0x70   :  { %1437 = vmatpush1.bf16.msra.mxu1 %v2546_v41  ;;  %v2624_v41 = vld [vmem:[#allocation3 + $0x308] ss:$16 sps:$4 sm:$0xff]  }
  0x71   :  { %1355 = vmatpush1.bf16.msra.mxu0 %v2543_v40  ;;  %1438 = vmatprep.subr.bf16.mxu1 %v2554_v43  ;;  %v2707_v40 = vld [vmem:[%s3160_s3 + $0x24] ss:$8 sps:$4 sm:$0xff]  }
  0x72   :  { %1356 = vmatprep.subr.bf16.mxu0 %v2551_v42  ;;  %v2705_v42 = vld [vmem:[%s3160_s3 + $0x20] ss:$8 sps:$4 sm:$0xff]   ;;  %v2629_v43 = vld [vmem:[#allocation3 + $0x32c] ss:$16 sps:$4 sm:$0xff]  }
  0x74   :  { %1439 = vmatpush1.bf16.msra.mxu1 %v2552_v45  ;;  %v2627_v45 = vld [vmem:[#allocation3 + $0x328] ss:$16 sps:$4 sm:$0xff]  }
  0x75   :  { %1357 = vmatpush1.bf16.msra.mxu0 %v2549_v44  ;;  %1440 = vmatprep.subr.bf16.mxu1 %v2560_v47  ;;  %v2710_v44 = vld [vmem:[%s3160_s3 + $0x34] ss:$8 sps:$4 sm:$0xff]  }
  0x76   :  { %1358 = vmatprep.subr.bf16.mxu0 %v2557_v46  ;;  %v2708_v46 = vld [vmem:[%s3160_s3 + $0x30] ss:$8 sps:$4 sm:$0xff]   ;;  %v2632_v47 = vld [vmem:[#allocation3 + $0x34c] ss:$16 sps:$4 sm:$0xff]  }
  0x78   :  { %1441 = vmatpush1.bf16.msra.mxu1 %v2558_v49  ;;  %v2630_v49 = vld [vmem:[#allocation3 + $0x348] ss:$16 sps:$4 sm:$0xff]  }
  0x79   :  { %1359 = vmatpush1.bf16.msra.mxu0 %v2555_v48  ;;  %1442 = vmatprep.subr.bf16.mxu1 %v2566_v51  ;;  %v2713_v48 = vld [vmem:[%s3160_s3 + $0x44] ss:$8 sps:$4 sm:$0xff]  }
  0x7a   :  { %1360 = vmatprep.subr.bf16.mxu0 %v2563_v50  ;;  %v2711_v50 = vld [vmem:[%s3160_s3 + $0x40] ss:$8 sps:$4 sm:$0xff]   ;;  %v2635_v51 = vld [vmem:[#allocation3 + $0x36c] ss:$16 sps:$4 sm:$0xff]  }
  0x7c   :  { %1443 = vmatpush1.bf16.msra.mxu1 %v2564_v54  ;;  %v2633_v54 = vld [vmem:[#allocation3 + $0x368] ss:$16 sps:$4 sm:$0xff]  }
  0x7d   :  { %1361 = vmatpush1.bf16.msra.mxu0 %v2561_v53  ;;  %1444 = vmatprep.subr.bf16.mxu1 %v2572_v56  ;;  %v2716_v53 = vld [vmem:[%s3160_s3 + $0x54] ss:$8 sps:$4 sm:$0xff]  }
  0x7e   :  { %1362 = vmatprep.subr.bf16.mxu0 %v2569_v55  ;;  %v2714_v55 = vld [vmem:[%s3160_s3 + $0x50] ss:$8 sps:$4 sm:$0xff]   ;;  %v2638_v56 = vld [vmem:[#allocation3 + $0x38c] ss:$16 sps:$4 sm:$0xff]  }
  0x80   :  { %1445 = vmatpush1.bf16.msra.mxu1 %v2570_v58  ;;  %v2636_v58 = vld [vmem:[#allocation3 + $0x388] ss:$16 sps:$4 sm:$0xff]  }
  0x81   :  { %1363 = vmatpush1.bf16.msra.mxu0 %v2567_v57  ;;  %1446 = vmatprep.subr.bf16.mxu1 %v2578_v60  ;;  %v2719_v57 = vld [vmem:[%s3160_s3 + $0x64] ss:$8 sps:$4 sm:$0xff]  }
  0x82   :  { %1364 = vmatprep.subr.bf16.mxu0 %v2575_v59  ;;  %v2717_v59 = vld [vmem:[%s3160_s3 + $0x60] ss:$8 sps:$4 sm:$0xff]   ;;  %v2641_v60 = vld [vmem:[#allocation3 + $0x3ac] ss:$16 sps:$4 sm:$0xff]  }
  0x84   :  { %1447 = vmatpush1.bf16.msra.mxu1 %v2576_v62  ;;  %v2639_v62 = vld [vmem:[#allocation3 + $0x3a8] ss:$16 sps:$4 sm:$0xff]  }
  0x85   :  { %1365 = vmatpush1.bf16.msra.mxu0 %v2573_v61  ;;  %1448 = vmatprep.subr.bf16.mxu1 %v2584_v0  ;;  %v2722_v61 = vld [vmem:[%s3160_s3 + $0x74] ss:$8 sps:$4 sm:$0xff]  }
  0x86   :  { %1366 = vmatprep.subr.bf16.mxu0 %v2581_v63  ;;  %v2720_v63 = vld [vmem:[%s3160_s3 + $0x70] ss:$8 sps:$4 sm:$0xff]   ;;  %v2644_v0 = vld [vmem:[#allocation3 + $0x3cc] ss:$16 sps:$4 sm:$0xff]  }
  0x88   :  { %1449 = vmatpush1.bf16.msra.mxu1 %v2582_v2  ;;  %v2642_v2 = vld [vmem:[#allocation3 + $0x3c8] ss:$16 sps:$4 sm:$0xff]  }
  0x89   :  { %1367 = vmatpush1.bf16.msra.mxu0 %v2579_v1  ;;  %1450 = vmatprep.subr.bf16.mxu1 %v2590_v4  ;;  %v2725_v1 = vld [vmem:[%s3160_s3 + $0x84] ss:$8 sps:$4 sm:$0xff]  }
  0x8a   :  { %1368 = vmatprep.subr.bf16.mxu0 %v2587_v3  ;;  %v2723_v3 = vld [vmem:[%s3160_s3 + $0x80] ss:$8 sps:$4 sm:$0xff]   ;;  %v2647_v4 = vld [vmem:[#allocation3 + $0x3ec] ss:$16 sps:$4 sm:$0xff]  }
  0x8c   :  { %1451 = vmatpush1.bf16.msra.mxu1 %v2588_v6  ;;  %v2645_v6 = vld [vmem:[#allocation3 + $0x3e8] ss:$16 sps:$4 sm:$0xff]  }
  0x8d   :  { %1369 = vmatpush1.bf16.msra.mxu0 %v2585_v5  ;;  %1452 = vmatprep.subr.bf16.mxu1 %v2596_v9  ;;  %v2728_v5 = vld [vmem:[%s3160_s3 + $0x94] ss:$8 sps:$4 sm:$0xff]  }
  0x8e   :  { %1370 = vmatprep.subr.bf16.mxu0 %v2593_v7  ;;  %v2726_v7 = vld [vmem:[%s3160_s3 + $0x90] ss:$8 sps:$4 sm:$0xff]   ;;  %v2650_v9 = vld [vmem:[#allocation3 + $0x40c] ss:$16 sps:$4 sm:$0xff]  }
  0x90   :  { %1453 = vmatpush1.bf16.msra.mxu1 %v2594_v12  ;;  %v2648_v12 = vld [vmem:[#allocation3 + $0x408] ss:$16 sps:$4 sm:$0xff]  }
  0x91   :  { %1371 = vmatpush1.bf16.msra.mxu0 %v2591_v10  ;;  %1463 = vmatprep.subr.bf16.mxu1 %v2599_v14  ;;  %v2731_v10 = vld [vmem:[%s3160_s3 + $0xa4] ss:$8 sps:$4 sm:$0xff]   ;;  %v2729_v14 = vld [vmem:[%s3160_s3 + $0xa0] ss:$8 sps:$4 sm:$0xff]  }
  0x92   :  { %1381 = vmatprep.subr.bf16.mxu0 %v2605_v15  ;;  %v2734_v15 = vld [vmem:[%s3160_s3 + $0xb4] ss:$8 sps:$4 sm:$0xff]  }
  0x93   :  { %1455 = vmatmul.mubr.bf16.vlgmr.msra.gmra.mrb[4].mxu1 %v2893_v8  ;;  %v2918_v8 = vpack.c.bf16 %v48_v24, %v48_v24  ;;  %v2657_v24 = vld [vmem:[#allocation3 + $0x468] ss:$16 sps:$4 sm:$0xff]  }
  0x94   :  { %1373 = vmatmul.mubr.bf16.vlgmr.msra.gmra.mrb[0].mxu0 %v2909_v16  ;;  %1464 = vmatpush1.bf16.msra.mxu1 %v2597_v17  ;;  %v2651_v17 = vld [vmem:[#allocation3 + $0x428] ss:$16 sps:$4 sm:$0xff]  }
  0x95   :  { %1382 = vmatpush1.bf16.msra.mxu0 %v2603_v18  ;;  %1465 = vmatprep.subr.bf16.mxu1 %v2602_v19  ;;  %v2656_v18 = vld [vmem:[#allocation3 + $0x44c] ss:$16 sps:$4 sm:$0xff]   ;;  %v2732_v19 = vld [vmem:[%s3160_s3 + $0xb0] ss:$8 sps:$4 sm:$0xff]  }
  0x96   :  { %1413 = vmatprep.mubr.bf16.mxu0 %v2822_v22  ;;  %1495 = vmatprep.mubr.bf16.mxu1 %v2883_v52  ;;  %v2618_v52 = vld [vmem:[#allocation3 + $0x2c8] ss:$16 sps:$4 sm:$0xff]  }
  0x97   :  { %1994 = vmatprep.subr.bf16.mxu0 %v2701_v34  ;;  %v2672_v34 = vld [vmem:[#allocation3 + $0x508] ss:$16 sps:$4 sm:$0xff]  }
  0x98   :  { %1466 = vmatpush1.bf16.msra.mxu1 %v2600_v20  ;;  %v2737_v20 = vld [vmem:[%s3160_s3 + $0xc4] ss:$8 sps:$4 sm:$0xff]  }
  0x99   :  { %1467 = vmatprep.subr.bf16.mxu1 %v2608_v21  ;;  %v2654_v21 = vld [vmem:[#allocation3 + $0x448] ss:$16 sps:$4 sm:$0xff]  }
  0x9c   :  { %1468 = vmatpush1.bf16.msra.mxu1 %v2606_v23  ;;  %v2740_v23 = vld [vmem:[%s3160_s3 + $0xd4] ss:$8 sps:$4 sm:$0xff]  }
  0x9d   :  { %1469 = vmatprep.subr.bf16.mxu1 %v2611_v25  ;;  %v2662_v25 = vld [vmem:[#allocation3 + $0x48c] ss:$16 sps:$4 sm:$0xff]  }
  0xa0   :  { %2303 = vmatmul.mubr.msk.bf16.vlgmr.msra.gmra.mrb[0].mxu0 %vm1254_vm0, %v2918_v8  ;;  %1470 = vmatpush1.bf16.msra.mxu1 %v2609_v26  ;;  %v2738_v26 = vld [vmem:[%s3160_s3 + $0xd0] ss:$8 sps:$4 sm:$0xff]  }
  0xa1   :  { %1471 = vmatprep.subr.bf16.mxu1 %v2614_v27  ;;  %1995 = vmatpush1.bf16.msra.mxu0 %v2699_v33  ;;  %v2660_v27 = vld [vmem:[#allocation3 + $0x488] ss:$16 sps:$4 sm:$0xff]   ;;  %v2674_v33 = vld [vmem:[#allocation3 + $0x50c] ss:$16 sps:$4 sm:$0xff]  }
  0xa2   :  { %1996 = vmatprep.subr.bf16.mxu0 %v2704_v36  ;;  %v2677_v36 = vld [vmem:[#allocation3 + $0x52c] ss:$16 sps:$4 sm:$0xff]  }
  0xa4   :  { %1472 = vmatpush1.bf16.msra.mxu1 %v2612_v28  ;;  %v2665_v28 = vld [vmem:[#allocation3 + $0x4ac] ss:$16 sps:$4 sm:$0xff]  }
  0xa5   :  { %1473 = vmatprep.subr.bf16.mxu1 %v2617_v29  ;;  %1997 = vmatpush1.bf16.msra.mxu0 %v2702_v38  ;;  %v2663_v29 = vld [vmem:[#allocation3 + $0x4a8] ss:$16 sps:$4 sm:$0xff]  }
  0xa6   :  { %1998 = vmatprep.subr.bf16.mxu0 %v2707_v40  ;;  %v2675_v38 = vld [vmem:[#allocation3 + $0x528] ss:$16 sps:$4 sm:$0xff]   ;;  %v2680_v40 = vld [vmem:[#allocation3 + $0x54c] ss:$16 sps:$4 sm:$0xff]  }
  0xa8   :  { %1474 = vmatpush1.bf16.msra.mxu1 %v2615_v30  ;;  %v2668_v30 = vld [vmem:[#allocation3 + $0x4cc] ss:$16 sps:$4 sm:$0xff]  }
  0xa9   :  { %1475 = vmatprep.subr.bf16.mxu1 %v2620_v31  ;;  %1999 = vmatpush1.bf16.msra.mxu0 %v2705_v42  ;;  %v2666_v31 = vld [vmem:[#allocation3 + $0x4c8] ss:$16 sps:$4 sm:$0xff]  }
  0xaa   :  { %2000 = vmatprep.subr.bf16.mxu0 %v2710_v44  ;;  %v2678_v42 = vld [vmem:[#allocation3 + $0x548] ss:$16 sps:$4 sm:$0xff]   ;;  %v2683_v44 = vld [vmem:[#allocation3 + $0x56c] ss:$16 sps:$4 sm:$0xff]  }
  0xac   :  { %1476 = vmatpush1.bf16.msra.mxu1 %v2618_v52  ;;  %v2671_v52 = vld [vmem:[#allocation3 + $0x4ec] ss:$16 sps:$4 sm:$0xff]  }
  0xad   :  { %1477 = vmatprep.subr.bf16.mxu1 %v2623_v32  ;;  %2001 = vmatpush1.bf16.msra.mxu0 %v2708_v46  ;;  %v2669_v32 = vld [vmem:[#allocation3 + $0x4e8] ss:$16 sps:$4 sm:$0xff]   ;;  %v2686_v46 = vld [vmem:[#allocation3 + $0x58c] ss:$16 sps:$4 sm:$0xff]  }
  0xae   :  { %2002 = vmatprep.subr.bf16.mxu0 %v2713_v48  ;;  %v2684_v48 = vld [vmem:[#allocation3 + $0x588] ss:$16 sps:$4 sm:$0xff]  }
  0xb0   :  { %1478 = vmatpush1.bf16.msra.mxu1 %v2621_v37  ;;  %v2743_v37 = vld [vmem:[%s3160_s3 + $0xe4] ss:$8 sps:$4 sm:$0xff]  }
  0xb1   :  { %1479 = vmatprep.subr.bf16.mxu1 %v2626_v39  ;;  %2003 = vmatpush1.bf16.msra.mxu0 %v2711_v50  ;;  %v2741_v39 = vld [vmem:[%s3160_s3 + $0xe0] ss:$8 sps:$4 sm:$0xff]  }
  0xb2   :  { %2004 = vmatprep.subr.bf16.mxu0 %v2716_v53  ;;  %v2687_v50 = vld [vmem:[#allocation3 + $0x5a8] ss:$16 sps:$4 sm:$0xff]  }
  0xb3   :  { %v2690_v53 = vld [vmem:[#allocation3 + $0x5c8] ss:$16 sps:$4 sm:$0xff]  }
  0xb4   :  { %1480 = vmatpush1.bf16.msra.mxu1 %v2624_v41  ;;  %v2746_v41 = vld [vmem:[%s3160_s3 + $0xf4] ss:$8 sps:$4 sm:$0xff]  }
  0xb5   :  { %1481 = vmatprep.subr.bf16.mxu1 %v2629_v43  ;;  %2005 = vmatpush1.bf16.msra.mxu0 %v2714_v55  ;;  %v2744_v43 = vld [vmem:[%s3160_s3 + $0xf0] ss:$8 sps:$4 sm:$0xff]  }
  0xb6   :  { %2006 = vmatprep.subr.bf16.mxu0 %v2719_v57  ;;  %v2693_v55 = vld [vmem:[#allocation3 + $0x5e8] ss:$16 sps:$4 sm:$0xff]  }
  0xb7   :  { %v2696_v57 = vld [vmem:[#allocation3 + $0x608] ss:$16 sps:$4 sm:$0xff]  }
  0xb8   :  { %1482 = vmatpush1.bf16.msra.mxu1 %v2627_v45  ;;  %v2681_v45 = vld [vmem:[#allocation3 + $0x568] ss:$16 sps:$4 sm:$0xff]  }
  0xb9   :  { %1483 = vmatprep.subr.bf16.mxu1 %v2632_v47  ;;  %2007 = vmatpush1.bf16.msra.mxu0 %v2717_v59  ;;  %v2749_v47 = vld [vmem:[%s3160_s3 + $0x104] ss:$8 sps:$4 sm:$0xff]  }
  0xba   :  { %2008 = vmatprep.subr.bf16.mxu0 %v2722_v61 }
  0xbc   :  { %1484 = vmatpush1.bf16.msra.mxu1 %v2630_v49  ;;  %v2689_v49 = vld [vmem:[#allocation3 + $0x5ac] ss:$16 sps:$4 sm:$0xff]  }
  0xbd   :  { %1485 = vmatprep.subr.bf16.mxu1 %v2635_v51  ;;  %2009 = vmatpush1.bf16.msra.mxu0 %v2720_v63  ;;  %v2692_v51 = vld [vmem:[#allocation3 + $0x5cc] ss:$16 sps:$4 sm:$0xff]  }
  0xbe   :  { %2010 = vmatprep.subr.bf16.mxu0 %v2725_v1 }
  0xc0   :  { %1486 = vmatpush1.bf16.msra.mxu1 %v2633_v54  ;;  %v2695_v54 = vld [vmem:[#allocation3 + $0x5ec] ss:$16 sps:$4 sm:$0xff]  }
  0xc1   :  { %1487 = vmatprep.subr.bf16.mxu1 %v2638_v56  ;;  %2011 = vmatpush1.bf16.msra.mxu0 %v2723_v3  ;;  %v2698_v56 = vld [vmem:[#allocation3 + $0x60c] ss:$16 sps:$4 sm:$0xff]  }
  0xc2   :  { %2012 = vmatprep.subr.bf16.mxu0 %v2728_v5 }
  0xc4   :  { %1488 = vmatpush1.bf16.msra.mxu1 %v2636_v58 }
  0xc5   :  { %1489 = vmatprep.subr.bf16.mxu1 %v2641_v60  ;;  %2013 = vmatpush1.bf16.msra.mxu0 %v2726_v7 }
  0xc6   :  { %2014 = vmatprep.subr.bf16.mxu0 %v2731_v10 }
  0xc8   :  { %1490 = vmatpush1.bf16.msra.mxu1 %v2639_v62  ;;  %v254_v62 = vlaneseq }
  0xc9   :  { %1491 = vmatprep.subr.bf16.mxu1 %v2644_v0  ;;  %2015 = vmatpush1.bf16.msra.mxu0 %v2729_v14 }
  0xca   :  { %2016 = vmatprep.subr.bf16.mxu0 %v2734_v15  ;;  %v3027_v63 = vshrl.u32 %v254_v62, 7 }
  0xcc   :  { %1492 = vmatpush1.bf16.msra.mxu1 %v2642_v2  ;;  %v3030_v0 = vsub.s32 0, %v3027_v63 }
  0xcd   :  { %1493 = vmatprep.subr.bf16.mxu1 %v2647_v4  ;;  %2017 = vmatpush1.bf16.msra.mxu0 %v2732_v19 }
  0xce   :  { %2018 = vmatprep.subr.bf16.mxu0 %v2737_v20  ;;  %v2752_v20 = vld [vmem:[%s3160_s3 + $0x114] ss:$8 sps:$4 sm:$0xff]  }
  0xd0   :  { %1494 = vmatpush1.bf16.msra.mxu1 %v2645_v6 }
  0xd1   :  { %1504 = vmatprep.subr.bf16.mxu1 %v2650_v9 }
  0xd3   :  { %1496 = vmatmul.mubr.bf16.vlgmr.msra.gmra.mrb[4].mxu1 %v2895_v11  ;;  %v2659_v11 = vld [vmem:[#allocation3 + $0x46c] ss:$16 sps:$4 sm:$0xff]  }
  0xd4   :  { %1505 = vmatpush1.bf16.msra.mxu1 %v2648_v12  ;;  %1536 = vmatprep.mubr.bf16.mxu1 %v2903_v35  ;;  %v2735_v35 = vld [vmem:[%s3160_s3 + $0xc0] ss:$8 sps:$4 sm:$0xff]  }
  0xd5   :  { %1506 = vmatprep.subr.bf16.mxu1 %v2653_v13  ;;  %2019 = vmatpush1.bf16.msra.mxu0 %v2735_v35  ;;  %v2753_v35 = vld [vmem:[%s3160_s3 + $0x120] ss:$8 sps:$4 sm:$0xff]  }
  0xd6   :  { %2020 = vmatprep.subr.bf16.mxu0 %v2740_v23  ;;  %v2758_v23 = vld [vmem:[%s3160_s3 + $0x134] ss:$8 sps:$4 sm:$0xff]  }
  0xd8   :  { %1507 = vmatpush1.bf16.msra.mxu1 %v2651_v17 }
  0xd9   :  { %1508 = vmatprep.subr.bf16.mxu1 %v2656_v18  ;;  %2021 = vmatpush1.bf16.msra.mxu0 %v2738_v26  ;;  %v2747_v18 = vld [vmem:[%s3160_s3 + $0x100] ss:$8 sps:$4 sm:$0xff]  }
  0xda   :  { %2022 = vmatprep.subr.bf16.mxu0 %v2743_v37  ;;  %v2759_v26 = vld [vmem:[%s3160_s3 + $0x140] ss:$8 sps:$4 sm:$0xff]   ;;  %v2779_v37 = vld [vmem:[%s3160_s3 + $0x1a4] ss:$8 sps:$4 sm:$0xff]  }
  0xdc   :  { %1509 = vmatpush1.bf16.msra.mxu1 %v2654_v21  ;;  %v2750_v21 = vld [vmem:[%s3160_s3 + $0x110] ss:$8 sps:$4 sm:$0xff]  }
  0xdd   :  { %1510 = vmatprep.subr.bf16.mxu1 %v2659_v11  ;;  %2023 = vmatpush1.bf16.msra.mxu0 %v2741_v39  ;;  %v2755_v11 = vld [vmem:[%s3160_s3 + $0x124] ss:$8 sps:$4 sm:$0xff]   ;;  %v2782_v39 = vld [vmem:[%s3160_s3 + $0x1b4] ss:$8 sps:$4 sm:$0xff]  }
  0xde   :  { %2024 = vmatprep.subr.bf16.mxu0 %v2746_v41  ;;  %v2785_v41 = vld [vmem:[%s3160_s3 + $0x1c4] ss:$8 sps:$4 sm:$0xff]  }
  0xe0   :  { %1511 = vmatpush1.bf16.msra.mxu1 %v2657_v24  ;;  %v2756_v24 = vld [vmem:[%s3160_s3 + $0x130] ss:$8 sps:$4 sm:$0xff]  }
  0xe1   :  { %1512 = vmatprep.subr.bf16.mxu1 %v2662_v25  ;;  %2025 = vmatpush1.bf16.msra.mxu0 %v2744_v43  ;;  %v2761_v25 = vld [vmem:[%s3160_s3 + $0x144] ss:$8 sps:$4 sm:$0xff]   ;;  %v2788_v43 = vld [vmem:[%s3160_s3 + $0x1d4] ss:$8 sps:$4 sm:$0xff]  }
  0xe2   :  { %2035 = vmatprep.subr.bf16.mxu0 %v2749_v47  ;;  %v2794_v47 = vld [vmem:[%s3160_s3 + $0x1f4] ss:$8 sps:$4 sm:$0xff]  }
  0xe4   :  { %1513 = vmatpush1.bf16.msra.mxu1 %v2660_v27  ;;  %v2764_v27 = vld [vmem:[%s3160_s3 + $0x154] ss:$8 sps:$4 sm:$0xff]  }
  0xe5   :  { %1514 = vmatprep.subr.bf16.mxu1 %v2665_v28  ;;  %v2762_v28 = vld [vmem:[%s3160_s3 + $0x150] ss:$8 sps:$4 sm:$0xff]  }
  0xe8   :  { %1515 = vmatpush1.bf16.msra.mxu1 %v2663_v29  ;;  %v2767_v29 = vld [vmem:[%s3160_s3 + $0x164] ss:$8 sps:$4 sm:$0xff]  }
  0xe9   :  { %1516 = vmatprep.subr.bf16.mxu1 %v2668_v30  ;;  %v2765_v30 = vld [vmem:[%s3160_s3 + $0x160] ss:$8 sps:$4 sm:$0xff]  }
  0xec   :  { %1517 = vmatpush1.bf16.msra.mxu1 %v2666_v31  ;;  %v2770_v31 = vld [vmem:[%s3160_s3 + $0x174] ss:$8 sps:$4 sm:$0xff]  }
  0xed   :  { %1518 = vmatprep.subr.bf16.mxu1 %v2671_v52  ;;  %v2768_v52 = vld [vmem:[%s3160_s3 + $0x170] ss:$8 sps:$4 sm:$0xff]  }
  0xf0   :  { %1519 = vmatpush1.bf16.msra.mxu1 %v2669_v32  ;;  %v2773_v32 = vld [vmem:[%s3160_s3 + $0x184] ss:$8 sps:$4 sm:$0xff]  }
  0xf1   :  { %1520 = vmatprep.subr.bf16.mxu1 %v2674_v33  ;;  %v2771_v33 = vld [vmem:[%s3160_s3 + $0x180] ss:$8 sps:$4 sm:$0xff]  }
  0xf4   :  { %1521 = vmatpush1.bf16.msra.mxu1 %v2672_v34  ;;  %v2776_v34 = vld [vmem:[%s3160_s3 + $0x194] ss:$8 sps:$4 sm:$0xff]  }
  0xf5   :  { %1522 = vmatprep.subr.bf16.mxu1 %v2677_v36  ;;  %v2774_v36 = vld [vmem:[%s3160_s3 + $0x190] ss:$8 sps:$4 sm:$0xff]  }
  0xf8   :  { %1523 = vmatpush1.bf16.msra.mxu1 %v2675_v38  ;;  %v2777_v38 = vld [vmem:[%s3160_s3 + $0x1a0] ss:$8 sps:$4 sm:$0xff]  }
  0xf9   :  { %1524 = vmatprep.subr.bf16.mxu1 %v2680_v40  ;;  %v2780_v40 = vld [vmem:[%s3160_s3 + $0x1b0] ss:$8 sps:$4 sm:$0xff]  }
  0xfc   :  { %1525 = vmatpush1.bf16.msra.mxu1 %v2678_v42  ;;  %v2783_v42 = vld [vmem:[%s3160_s3 + $0x1c0] ss:$8 sps:$4 sm:$0xff]  }
  0xfd   :  { %1526 = vmatprep.subr.bf16.mxu1 %v2683_v44  ;;  %v2786_v44 = vld [vmem:[%s3160_s3 + $0x1d0] ss:$8 sps:$4 sm:$0xff]  }
 0x100   :  { %1527 = vmatpush1.bf16.msra.mxu1 %v2681_v45  ;;  %v2791_v45 = vld [vmem:[%s3160_s3 + $0x1e4] ss:$8 sps:$4 sm:$0xff]  }
 0x101   :  { %1528 = vmatprep.subr.bf16.mxu1 %v2686_v46  ;;  %v2789_v46 = vld [vmem:[%s3160_s3 + $0x1e0] ss:$8 sps:$4 sm:$0xff]  }
 0x104   :  { %1529 = vmatpush1.bf16.msra.mxu1 %v2684_v48  ;;  %v2792_v48 = vld [vmem:[%s3160_s3 + $0x1f0] ss:$8 sps:$4 sm:$0xff]  }
 0x105   :  { %1530 = vmatprep.subr.bf16.mxu1 %v2689_v49  ;;  %v264_v49 = vsub.s32 2, %v3027_v63 }
 0x108   :  { %1531 = vmatpush1.bf16.msra.mxu1 %v2687_v50  ;;  %v268_v50 = vsub.s32 3, %v3027_v63 }
 0x109   :  { %1532 = vmatprep.subr.bf16.mxu1 %v2692_v51 }
 0x10c   :  { %1533 = vmatpush1.bf16.msra.mxu1 %v2690_v53 }
 0x10d   :  { %1534 = vmatprep.subr.bf16.mxu1 %v2695_v54 }
 0x110   :  { %1535 = vmatpush1.bf16.msra.mxu1 %v2693_v55 }
 0x111   :  { %1545 = vmatprep.subr.bf16.mxu1 %v2698_v56 }
 0x113   :  { %1537 = vmatmul.mubr.bf16.vlgmr.msra.gmra.mrb[4].mxu1 %v2909_v16  ;;  %v3035_v16 = vld [vmem:[%s3159_s2] sm:$0xf] }
 0x114   :  { %1546 = vmatpush1.bf16.msra.mxu1 %v2696_v57  ;;  %1577 = vmatprep.mubr.bf16.mxu1 %v2822_v22  ;;  %v3038_v22 = vsub.s32 1, %v3027_v63  ;;  %v265_v51 = vrot.slane %v3035_v16, %v264_v49  ;;  %v269_v53 = vrot.slane %v3035_v16, %v268_v50  ;;  %v1662_v63 = vld [vmem:[%s3161_s4] sm:$0x3] }
 0x116   :  { %v261_v1 = vrot.slane %v3035_v16, %v3038_v22 }
 0x11f   :  { %2304 = vmatmul.mubr.msk.bf16.vlgmr.msra.gmra.mrb[4].mxu1 %vm1254_vm0, %v2918_v8  ;;  %v257_v8 = vrot.slane %v3035_v16, %v3030_v0  ;;  %v1667_v16 = vrot.slane %v1662_v63, %v3030_v0 }
 0x126   :  { %v1292_v58 = vpop.f32.mrb[0].mxu1 }
 0x127   :  { %v1294_v59 = vpop.f32.mrb[1].mxu1  ;;  %v1293_v2 = vadd.f32 %v1292_v58, %v257_v8 }
 0x128   :  { %v1296_v60 = vpop.f32.mrb[2].mxu1  ;;  %v1295_v3 = vadd.f32 %v1294_v59, %v261_v1 }
 0x129   :  { %v1297_v61 = vpop.f32.mrb[3].mxu1 }
 0x173   :  { %v1415_v4 = vpop.f32.mrb[0].mxu0 }
 0x174   :  { %v2370_v5 = vadd.f32 %v1415_v4, %v1293_v2  ;;  %v1417_v6 = vpop.f32.mrb[1].mxu0 }
 0x175   :  { %v2372_v7 = vadd.f32 %v1417_v6, %v1295_v3  ;;  %v1419_v9 = vpop.f32.mrb[2].mxu0  ;;  %v1671_v3 = vrot.slane %v1662_v63, %v3038_v22 }
 0x176   :  { %v1586_v10 = vmul.f32 0.2, %v2370_v5  ;;  %v1420_v12 = vpop.f32.mrb[3].mxu0 }
 0x177   :  { %v1587_v13 = vmul.f32 0.2, %v2372_v7 }
 0x178   :  { %v1590_v14 = vmax.f32 %v2370_v5, %v1586_v10  ;;  %v2080_v5 = vld [vmem:[%s3162_s5] sm:$0x3] }
 0x179   :  { %v1591_v15 = vmax.f32 %v2372_v7, %v1587_v13 }
 0x17a   :  { %v1594_v19 = vpack.c.bf16 %v1590_v14, %v1590_v14  ;;  %v2085_v14 = vrot.slane %v2080_v5, %v3030_v0 }
 0x17b   :  { %v1595_v17 = vpack.c.bf16 %v1591_v15, %v1591_v15 }
 0x17d   :  { %2026 = vmatprep.mubr.bf16.mxu0 %v1595_v17  ;;  %v2089_v17 = vrot.slane %v2080_v5, %v3038_v22 }
 0x17e   :  { %2027 = vmatmul.mubr.bf16.vlgmr.msra.gmra.mrb[4].mxu0 %v1594_v19 }
 0x17f   :  { %2036 = vmatpush1.bf16.msra.mxu0 %v2747_v18 }
 0x180   :  { %2037 = vmatprep.subr.bf16.mxu0 %v2752_v20 }
 0x183   :  { %2038 = vmatpush1.bf16.msra.mxu0 %v2750_v21 }
 0x184   :  { %2039 = vmatprep.subr.bf16.mxu0 %v2755_v11 }
 0x187   :  { %2040 = vmatpush1.bf16.msra.mxu0 %v2753_v35  ;;  %v2098_v35 = vstv %s3163_s6 }
 0x188   :  { %2041 = vmatprep.subr.bf16.mxu0 %v2758_v23 }
 0x18b   :  { %2042 = vmatpush1.bf16.msra.mxu0 %v2756_v24 }
 0x18c   :  { %2043 = vmatprep.subr.bf16.mxu0 %v2761_v25 }
 0x18f   :  { %2044 = vmatpush1.bf16.msra.mxu0 %v2759_v26 }
 0x190   :  { %2045 = vmatprep.subr.bf16.mxu0 %v2764_v27 }
 0x193   :  { %2046 = vmatpush1.bf16.msra.mxu0 %v2762_v28 }
 0x194   :  { %2047 = vmatprep.subr.bf16.mxu0 %v2767_v29 }
 0x197   :  { %2048 = vmatpush1.bf16.msra.mxu0 %v2765_v30 }
 0x198   :  { %2049 = vmatprep.subr.bf16.mxu0 %v2770_v31 }
 0x19b   :  { %2050 = vmatpush1.bf16.msra.mxu0 %v2768_v52 }
 0x19c   :  { %2051 = vmatprep.subr.bf16.mxu0 %v2773_v32 }
 0x19f   :  { %2052 = vmatpush1.bf16.msra.mxu0 %v2771_v33 }
 0x1a0   :  { %2053 = vmatprep.subr.bf16.mxu0 %v2776_v34 }
 0x1a3   :  { %2054 = vmatpush1.bf16.msra.mxu0 %v2774_v36 }
 0x1a4   :  { %2055 = vmatprep.subr.bf16.mxu0 %v2779_v37 }
 0x1a7   :  { %2056 = vmatpush1.bf16.msra.mxu0 %v2777_v38 }
 0x1a8   :  { %2057 = vmatprep.subr.bf16.mxu0 %v2782_v39 }
 0x1ab   :  { %2058 = vmatpush1.bf16.msra.mxu0 %v2780_v40 }
 0x1ac   :  { %2059 = vmatprep.subr.bf16.mxu0 %v2785_v41 }
 0x1af   :  { %2060 = vmatpush1.bf16.msra.mxu0 %v2783_v42 }
 0x1b0   :  { %2061 = vmatprep.subr.bf16.mxu0 %v2788_v43 }
 0x1b3   :  { %2062 = vmatpush1.bf16.msra.mxu0 %v2786_v44 }
 0x1b4   :  { %2063 = vmatprep.subr.bf16.mxu0 %v2791_v45 }
 0x1b7   :  { %2064 = vmatpush1.bf16.msra.mxu0 %v2789_v46 }
 0x1b8   :  { %2065 = vmatprep.subr.bf16.mxu0 %v2794_v47 }
 0x1bb   :  { %2066 = vmatpush1.bf16.msra.mxu0 %v2792_v48 }
 0x1f2   :  { %v1579_v54 = vpop.f32.mrb[4].mxu1 }
 0x1f3   :  { %v2373_v55 = vadd.f32 %v1579_v54, %v265_v51  ;;  %v1581_v56 = vpop.f32.mrb[5].mxu1 }
 0x1f4   :  { %v2374_v57 = vadd.f32 %v1581_v56, %v269_v53  ;;  %v1583_v58 = vpop.f32.mrb[6].mxu1 }
 0x1f5   :  { %v1588_v59 = vmul.f32 0.2, %v2373_v55  ;;  %v1584_v60 = vpop.f32.mrb[7].mxu1 }
 0x1f6   :  { %v1589_v61 = vmul.f32 0.2, %v2374_v57 }
 0x1f7   :  { %v1592_v62 = vmax.f32 %v2373_v55, %v1588_v59 }
 0x1f8   :  { %v1593_v8 = vmax.f32 %v2374_v57, %v1589_v61 }
 0x1f9   :  { %v1596_v2 = vpack.c.bf16 %v1592_v62, %v1592_v62 }
 0x1fa   :  { %v1597_v1 = vpack.c.bf16 %v1593_v8, %v1593_v8 }
 0x1fc   :  { %2067 = vmatprep.mubr.bf16.mxu0 %v1597_v1 }
 0x1fd   :  { %2068 = vmatmul.mubr.bf16.vlgmr.msra.gmra.mrb[4].mxu0 %v1596_v2 }
 0x2d0   :  { %v2069_v4 = vpop.f32.mrb[4].mxu0 }
 0x2d1   :  { %v2375_v6 = vadd.f32 %v2069_v4, %v1667_v16  ;;  %v2071_v7 = vpop.f32.mrb[5].mxu0 }
 0x2d2   :  { %v2376_v9 = vadd.f32 %v2071_v7, %v1671_v3  ;;  %v2073_v10 = vpop.f32.mrb[6].mxu0 }
 0x2d3   :  { %v2076_v12 = vmul.f32 0.2, %v2375_v6  ;;  %v2074_v13 = vpop.f32.mrb[7].mxu0 }
 0x2d4   :  { %v2077_v15 = vmul.f32 0.2, %v2376_v9 }
 0x2d5   :  { %v2078_v18 = vmax.f32 %v2375_v6, %v2076_v12 }
 0x2d6   :  { %v2079_v19 = vmax.f32 %v2376_v9, %v2077_v15 }
 0x2d7   :  { %v2092_v20 = vmul.f32 %v2085_v14, %v2078_v18 }
 0x2d8   :  { %v2093_v21 = vmul.f32 %v2089_v17, %v2079_v19 }
 0x2da   :  { %v2094_v11 = vadd.f32 %v2093_v21, %v2092_v20 }
 0x2dc   :  { %2095 = vadd.xlane.f32.xlu0 %v2094_v11 }
 0x369   :  { %v2096_v23 = vpop.xlane.xlu0 %2095 }
 0x36a   :  { %v2099_v24 = vadd.f32 %v2098_v35, %v2096_v23 }
 0x36c   :  { %2101 = vst.msk [vmem:[%s3164_s7] sm:$0xff] %vm2100_vm1, %v2099_v24 }
 0x36d   :  { %2106 = vsyncpa [#allocation4], 1 }

</bundles_post_ra>
